<compile_context>
chip_gen: v7x
topology: tpu7x:2x2x1
jax: 0.10.0
libtpu: 0.0.40
codegen_flags: <defaults>
</compile_context>

<pallas_src>
import functools
from datetime import timedelta

import numpy as np
import jax
import jax.numpy as jnp
from jax.experimental import pallas as pl
from jax.experimental.pallas import tpu as pltpu


def _round_up(x: int, m: int) -> int:
    return ((x + m - 1) // m) * m


def _supports_bf16_vpu() -> bool:
    """True on generations with native bf16 VALUs (v6e and later)."""
    try:
        kind = jax.devices()[0].device_kind.lower()
    except Exception:
        return True
    return not any(v in kind for v in ("v2", "v3", "v4", "v5"))


def _dn_pos_enc_kernel(x_ref, o_ref, *, inv_h, degree, seq_len, tile_t, compute_dtype):
    """One (tr, tile_t) row tile; differentiates along the lane (last) axis."""
    x = x_ref[...].astype(compute_dtype)                      # (tr, tile_t)

    # Per-lane stencil coefficients, built once from a (1, tile_t) lane iota
    # (broadcasts over sublanes/rows — no full-tile int32 iota, no per-degree
    # where-chains).  Wrap-around lanes from the roll land on zero
    # coefficients, and padded lanes (>= seq_len) are never stored to real
    # output columns, so no extra masking is needed.
    lane = jax.lax.broadcasted_iota(jnp.int32, (1, tile_t), 1)
    is_first = lane == 0
    is_last = lane == (seq_len - 1)
    inv_h_c = jnp.asarray(inv_h, compute_dtype)
    inv_2h_c = jnp.asarray(0.5 * inv_h, compute_dtype)
    zero = jnp.zeros((), compute_dtype)
    # g[i] = cp[i]*x[i+1] + cc[i]*x[i] + cm[i]*x[i-1]
    cp = jnp.where(is_last, zero, jnp.where(is_first, inv_h_c, inv_2h_c))
    cm = jnp.where(is_first, zero, jnp.where(is_last, -inv_h_c, -inv_2h_c))
    cc = jnp.where(is_first, -inv_h_c, jnp.where(is_last, inv_h_c, zero))

    out = x
    cur = x
    for _ in range(degree):                                   # static -> unrolled
        xm = pltpu.roll(cur, shift=1, axis=1)                 # cur[i-1] (wrap masked by cm)
        xp = pltpu.roll(cur, shift=tile_t - 1, axis=1)        # cur[i+1] (wrap masked by cp)
        g = xp * cp + cur * cc + xm * cm                      # 3 mul + 2 add per elem
        out = out + g
        cur = g

    o_ref[...] = out.astype(o_ref.dtype)


def dn_positional_encoding(x, delta_t: timedelta, degree: int = 1,
                           edge_order: int = 1, donate_input: bool = False):
    """Pallas implementation of DnPositionalEncoding.forward. x: (B, C, T)."""
    if edge_order != 1:
        # TODO(synk): edge_order=2 (second-order one-sided boundary stencil) not implemented.
        raise NotImplementedError("only edge_order=1 is supported")

    h = float(delta_t.total_seconds())
    if h == 0.0:
        raise ValueError("delta_t must be non-zero")

    B, C, T = x.shape
    if T < 2:
        raise ValueError("gradient along dim=-1 requires T >= 2")

    R = B * C

    # Generation-aware compute dtype: bf16 arithmetic only where the VPU has
    # native bf16 (v6e+); otherwise upcast to f32 after load (bf16 stays
    # packed in HBM/VMEM for bandwidth either way).
    if x.dtype == jnp.bfloat16 and _supports_bf16_vpu():
        compute_dtype = jnp.bfloat16
    else:
        compute_dtype = jnp.float32

    itemsize_in = jnp.dtype(x.dtype).itemsize
    itemsize_cmp = jnp.dtype(compute_dtype).itemsize

    # Lane padding only when T is not 128-aligned (keeps pltpu.roll on its
    # 128-aligned path and stores lane-dense).  Rows are NEVER padded.
    T_pad = T if T % 128 == 0 else _round_up(T, 128)

    # VMEM budget per row: 2x double-buffered input + 2x output tiles in the
    # storage dtype, plus ~6 live tile-sized temporaries in the compute dtype.
    bytes_per_row = T_pad * (4 * itemsize_in + 6 * itemsize_cmp)
    vmem_budget = 24 * 1024 * 1024
    tr_cap = max(8, (vmem_budget // bytes_per_row) // 8 * 8)

    R8 = _round_up(R, 8)
    steps = pl.cdiv(R8, tr_cap)
    if R8 > 8:
        steps = max(steps, 2)        # >=2 steps: overlap DMA with compute
        steps = _round_up(steps, 2)  # even: balances across v7x's 2 TensorCores
    tr = min(_round_up(pl.cdiv(R8, steps), 8), R8)
    if R < 8:
        tr = R                       # block dim == array dim is always legal
    grid = pl.cdiv(R, tr)            # last block may be ragged (rows masked)

    x2 = x.reshape(R, T)
    lane_padded = T_pad != T
    if lane_padded:
        # Zeros keep wrapped/padded lanes finite; they never reach real output.
        x2 = jnp.pad(x2, ((0, 0), (0, T_pad - T)))

    est_vmem = tr * T_pad * (4 * itemsize_in + 6 * itemsize_cmp)
    vmem_limit = max(32 * 1024 * 1024, int(est_vmem * 1.25))

    kernel = functools.partial(
        _dn_pos_enc_kernel,
        inv_h=1.0 / h,
        degree=int(degree),
        seq_len=T,
        tile_t=T_pad,
        compute_dtype=compute_dtype,
    )

    # Donation only possible when the kernel input/output buffers are identical
    # in shape and dtype (i.e. no lane padding happened).
    aliases = {0: 0} if (donate_input and not lane_padded) else {}

    flat = pl.pallas_call(
        kernel,
        out_shape=jax.ShapeDtypeStruct((R, T_pad), x.dtype),
        grid_spec=pltpu.PrefetchScalarGridSpec(
            num_scalar_prefetch=0,
            grid=(grid,),
            in_specs=[pl.BlockSpec((tr, T_pad), lambda i: (i, 0))],
            out_specs=pl.BlockSpec((tr, T_pad), lambda i: (i, 0)),
        ),
        compiler_params=pltpu.CompilerParams(
            dimension_semantics=("parallel",),
            vmem_limit_bytes=vmem_limit,
        ),
        input_output_aliases=aliases,
    )(x2)

    out2 = flat[:, :T] if lane_padded else flat
    return out2.reshape(B, C, T)


def _reference(x, delta_t: timedelta, degree: int = 1):
    """Pure-JAX reference mirroring torch.gradient(edge_order=1) semantics."""
    h = float(delta_t.total_seconds())
    out = x
    cur = x
    for _ in range(degree):
        cur = jnp.gradient(cur, h, axis=-1)
        out = out + cur
    return out


if __name__ == "__main__":
    delta_t = timedelta(seconds=0.5)
    degree = 2

    # Case 1: lane-aligned T (multiple of 128), single row block.
    B, C, T = 2, 4, 128
    x = jax.random.normal(jax.random.PRNGKey(0), (B, C, T), dtype=jnp.float32)
    out = jax.block_until_ready(dn_positional_encoding(x, delta_t, degree=degree))
    ref = _reference(x, delta_t, degree=degree)
    np.testing.assert_allclose(np.asarray(out), np.asarray(ref), rtol=1e-5, atol=1e-5)

    # Case 2: ragged rows (R=15, masked last row block) + small T (<128) lane-pad path.
    B2, C2, T2 = 3, 5, 96
    x2 = jax.random.normal(jax.random.PRNGKey(1), (B2, C2, T2), dtype=jnp.float32)
    out2 = jax.block_until_ready(dn_positional_encoding(x2, delta_t, degree=degree))
    ref2 = _reference(x2, delta_t, degree=degree)
    np.testing.assert_allclose(np.asarray(out2), np.asarray(ref2), rtol=1e-5, atol=1e-5)

    # Case 3: multi-step even grid with ragged last block, T multiple of 128, degree=1.
    B3, C3, T3 = 2, 9, 256
    x3 = jax.random.normal(jax.random.PRNGKey(2), (B3, C3, T3), dtype=jnp.float32)
    out3 = jax.block_until_ready(dn_positional_encoding(x3, delta_t, degree=1))
    ref3 = _reference(x3, delta_t, degree=1)
    np.testing.assert_allclose(np.asarray(out3), np.asarray(ref3), rtol=1e-5, atol=1e-5)

    print("KERNEL_OK")
</pallas_src>

<mosaic_0001>
module attributes {stable_mosaic.version = 11 : i64} {
  func.func @_dn_pos_enc_kernel(%arg0: i32, %arg1: memref<8x128xf32, #tpu.memory_space<vmem>>, %arg2: memref<8x128xf32, #tpu.memory_space<vmem>>) attributes {dimension_semantics = [#tpu.dimension_semantics<parallel>], iteration_bounds = array<i64: 1>, scalar_prefetch = 0 : i64, scratch_operands = 0 : i64, tpu.core_type = #tpu.core_type<tc>, window_params = [{transform_indices = @transform_0, window_bounds = array<i64: 8, 128>}, {transform_indices = @transform_1, window_bounds = array<i64: 8, 128>}]} {
    %c0 = arith.constant 0 : index
    %c0_0 = arith.constant 0 : index
    %0 = vector.load %arg1[%c0, %c0_0] : memref<8x128xf32, #tpu.memory_space<vmem>>, vector<8x128xf32>
    %1 = tpu.iota {dimensions = array<i32: 1>} : vector<1x128xi32>
    %c0_i32 = arith.constant 0 : i32
    %2 = vector.broadcast %c0_i32 : i32 to vector<1x128xi32>
    %3 = arith.cmpi eq, %1, %2 : vector<1x128xi32>
    %c127_i32 = arith.constant 127 : i32
    %4 = vector.broadcast %c127_i32 : i32 to vector<1x128xi32>
    %5 = arith.cmpi eq, %1, %4 : vector<1x128xi32>
    %cst = arith.constant 2.000000e+00 : f32
    %cst_1 = arith.constant 1.000000e+00 : f32
    %6 = vector.broadcast %cst : f32 to vector<1x128xf32>
    %7 = vector.broadcast %cst_1 : f32 to vector<1x128xf32>
    %8 = arith.select %3, %6, %7 : vector<1x128xi1>, vector<1x128xf32>
    %cst_2 = arith.constant 0.000000e+00 : f32
    %9 = vector.broadcast %cst_2 : f32 to vector<1x128xf32>
    %10 = arith.select %5, %9, %8 : vector<1x128xi1>, vector<1x128xf32>
    %cst_3 = arith.constant 0.000000e+00 : f32
    %cst_4 = arith.constant 2.000000e+00 : f32
    %11 = arith.subf %cst_3, %cst_4 : f32
    %cst_5 = arith.constant 0.000000e+00 : f32
    %cst_6 = arith.constant 1.000000e+00 : f32
    %12 = arith.subf %cst_5, %cst_6 : f32
    %13 = vector.broadcast %11 : f32 to vector<1x128xf32>
    %14 = vector.broadcast %12 : f32 to vector<1x128xf32>
    %15 = arith.select %5, %13, %14 : vector<1x128xi1>, vector<1x128xf32>
    %cst_7 = arith.constant 0.000000e+00 : f32
    %16 = vector.broadcast %cst_7 : f32 to vector<1x128xf32>
    %17 = arith.select %3, %16, %15 : vector<1x128xi1>, vector<1x128xf32>
    %cst_8 = arith.constant 0.000000e+00 : f32
    %cst_9 = arith.constant 2.000000e+00 : f32
    %18 = arith.subf %cst_8, %cst_9 : f32
    %cst_10 = arith.constant 2.000000e+00 : f32
    %cst_11 = arith.constant 0.000000e+00 : f32
    %19 = vector.broadcast %cst_10 : f32 to vector<1x128xf32>
    %20 = vector.broadcast %cst_11 : f32 to vector<1x128xf32>
    %21 = arith.select %5, %19, %20 : vector<1x128xi1>, vector<1x128xf32>
    %22 = vector.broadcast %18 : f32 to vector<1x128xf32>
    %23 = arith.select %3, %22, %21 : vector<1x128xi1>, vector<1x128xf32>
    %c1_i32 = arith.constant 1 : i32
    %24 = tpu.dynamic_rotate %0 by %c1_i32 dim 1 : vector<8x128xf32>, i32 -> vector<8x128xf32>
    %c127_i32_12 = arith.constant 127 : i32
    %25 = tpu.dynamic_rotate %0 by %c127_i32_12 dim 1 : vector<8x128xf32>, i32 -> vector<8x128xf32>
    %26 = vector.broadcast %10 : vector<1x128xf32> to vector<8x128xf32>
    %27 = arith.mulf %25, %26 : vector<8x128xf32>
    %28 = vector.broadcast %23 : vector<1x128xf32> to vector<8x128xf32>
    %29 = arith.mulf %0, %28 : vector<8x128xf32>
    %30 = arith.addf %27, %29 : vector<8x128xf32>
    %31 = vector.broadcast %17 : vector<1x128xf32> to vector<8x128xf32>
    %32 = arith.mulf %24, %31 : vector<8x128xf32>
    %33 = arith.addf %30, %32 : vector<8x128xf32>
    %34 = arith.addf %0, %33 : vector<8x128xf32>
    %c1_i32_13 = arith.constant 1 : i32
    %35 = tpu.dynamic_rotate %33 by %c1_i32_13 dim 1 : vector<8x128xf32>, i32 -> vector<8x128xf32>
    %c127_i32_14 = arith.constant 127 : i32
    %36 = tpu.dynamic_rotate %33 by %c127_i32_14 dim 1 : vector<8x128xf32>, i32 -> vector<8x128xf32>
    %37 = vector.broadcast %10 : vector<1x128xf32> to vector<8x128xf32>
    %38 = arith.mulf %36, %37 : vector<8x128xf32>
    %39 = vector.broadcast %23 : vector<1x128xf32> to vector<8x128xf32>
    %40 = arith.mulf %33, %39 : vector<8x128xf32>
    %41 = arith.addf %38, %40 : vector<8x128xf32>
    %42 = vector.broadcast %17 : vector<1x128xf32> to vector<8x128xf32>
    %43 = arith.mulf %35, %42 : vector<8x128xf32>
    %44 = arith.addf %41, %43 : vector<8x128xf32>
    %45 = arith.addf %34, %44 : vector<8x128xf32>
    %c0_15 = arith.constant 0 : index
    %c0_16 = arith.constant 0 : index
    %46 = vector.load %arg2[%c0_15, %c0_16] : memref<8x128xf32, #tpu.memory_space<vmem>>, vector<8x128xf32>
    tpu.vector_store %arg2[%c0_15, %c0_16], %45 {strides = array<i32>} : memref<8x128xf32, #tpu.memory_space<vmem>>, vector<8x128xf32>,
    return
  }
  func.func @transform_0(%arg0: i32) -> (i32, i32) {
    %c0_i32 = arith.constant 0 : i32
    %c0_i32_0 = arith.constant 0 : i32
    return %arg0, %c0_i32 : i32, i32
  }
  func.func @transform_1(%arg0: i32) -> (i32, i32) {
    %c0_i32 = arith.constant 0 : i32
    %c0_i32_0 = arith.constant 0 : i32
    return %arg0, %c0_i32 : i32, i32
  }
}

</mosaic_0001>

<bundles_post_ra>
// kernel: tpu_custom_call.1
= control target key start
LH: loop header
LB: loop body
LE: loop exit
PB: predicated region body
PF: predicated region fallthrough
CT: control target
= control target key end

     0   :  { %6 = vsyncpa [#allocation3], 0  ;;  %s164_s0 = inlined_call_operand.hbm [shape: f32[8,128], index: 0, kind: input, shape index: {}]   ;;  %s165_s1 = inlined_call_operand.hbm [shape: f32[8,128], index: 1, kind: output, shape index: {}]  }
   0x1   :  { %7 = vsyncpa [#allocation4], 0  ;;  %s123_s6 = smov [#allocation2]   ;;  %s75_s10 = scalar_lea.hbm %s164_s0, 128 }
   0x2   :  { %s14_s7 = sshll.u32 %s123_s6, 4  ;;  %p76_p0 = scmp.ne.s32.totalorder %s164_s0, %s75_s10  ;;  %s15_s7 = int_to_ptr.vmem [resolvable:$true] %s14_s7 }
   0x3   :  { %p79_p1 = scmp.lt.u32.totalorder %s75_s10, %s164_s0 }
   0x5   :  { %p81_p2 = pnand %p79_p1, %p76_p0 }
   0x7   :  { %84 = shalt.err (!%p81_p2)
}
   0x8   :  { %s85_s15 = scalar_lea.vmem %s15_s7, 128  ;;  %p90_p4 = scmp.lt.s32.totalorder %s15_s7, %s15_s7 }
   0x9   :  { %p86_p3 = scmp.ne.s32.totalorder %s15_s7, %s85_s15  ;;  %p91_p5 = scmp.lt.s32.totalorder %s85_s15, %s85_s15 }
   0xb   :  { %p92_p6 = por %p91_p5, %p90_p4 }
   0xd   :  { %p93_p7 = pnand %p92_p6, %p86_p3 }
   0xf   :  { %96 = shalt.err (!%p93_p7)
}
  0x10   :  { %17 = dma.hbm_to_vmem [thread:$0]  %s164_s0, 128, %s15_s7, [#allocation3]  }
  0x11   :  { %119 = dma.done.wait [#allocation3], 128  }
  0x12   :  { %120 = vsyncadd [#allocation3], 4294967168  ;;  %v21_v0 = vld [vmem:[#allocation2] sm:$0xff]  ;;  %s124_s18 = smov 127   ;;  %s125_s19 = smov 1   ;;  %v22_v1 = vlaneseq  ;;  %v126_v3 = vmov 1.0  }
  0x13   :  { %34 = vrot.lane.b32.xlu0 %v21_v0, %s124_s18  ;;  %v127_v5 = vmov 0.0   ;;  %v128_v9 = vmov -1.0   ;;  %s129_s0 = smov [#allocation5]  }
  0x14   :  { %v23_v2 = vand.u32 127, %v22_v1  ;;  %s59_s20 = sshll.u32 %s129_s0, 4  ;;  %s60_s20 = int_to_ptr.vmem [resolvable:$true] %s59_s20 }
  0x15   :  { %s97_s21 = scalar_lea.vmem %s60_s20, 128  ;;  %p102_p9 = scmp.lt.s32.totalorder %s60_s20, %s60_s20 }
  0x16   :  { %vm24_vm0 = vcmp.eq.s32.totalorder %v23_v2, 0  ;;  %vm25_vm1 = vcmp.eq.s32.totalorder %v23_v2, 127  ;;  %p98_p8 = scmp.ne.s32.totalorder %s60_s20, %s97_s21  ;;  %p103_p10 = scmp.lt.s32.totalorder %s97_s21, %s97_s21 }
  0x17   :  { %32 = vrot.lane.b32.xlu0 %v21_v0, %s125_s19  ;;  %v26_v4 = vsel %vm24_vm0, 2.0, %v126_v3  ;;  %v30_v6 = vsel %vm25_vm1, 2.0, %v127_v5  ;;  %v28_v10 = vsel %vm25_vm1, -2.0, %v128_v9 }
  0x18   :  { %v27_v7 = vsel %vm25_vm1, 0.0, %v26_v4  ;;  %v31_v8 = vsel %vm24_vm0, -2.0, %v30_v6  ;;  %v29_v14 = vsel %vm24_vm0, 0.0, %v28_v10  ;;  %p104_p11 = por %p103_p10, %p102_p9 }
  0x19   :  { %v37_v13 = vmul.f32 %v31_v8, %v21_v0 }
  0x1a   :  { %p105_p12 = pnand %p104_p11, %p98_p8 }
  0x85   :  { %v35_v11 = vpop.permute.xlu0 %34 }
  0x86   :  { %v36_v12 = vmul.f32 %v35_v11, %v27_v7 }
  0x88   :  { %v38_v16 = vadd.f32 %v37_v13, %v36_v12 }
  0x89   :  { %v33_v15 = vpop.permute.xlu0 %32 }
  0x8a   :  { %v39_v17 = vmul.f32 %v33_v15, %v29_v14 }
  0x8c   :  { %v40_v18 = vadd.f32 %v39_v17, %v38_v16 }
  0x8e   :  { %44 = vrot.lane.b32.xlu1 %v40_v18, %s124_s18  ;;  %v47_v21 = vmul.f32 %v40_v18, %v31_v8  ;;  %v41_v26 = vadd.f32 %v40_v18, %v21_v0 }
  0x92   :  { %42 = vrot.lane.b32.xlu1 %v40_v18, %s125_s19 }
 0x100   :  { %v45_v19 = vpop.permute.xlu1 %44 }
 0x101   :  { %v46_v20 = vmul.f32 %v45_v19, %v27_v7 }
 0x103   :  { %v48_v23 = vadd.f32 %v47_v21, %v46_v20 }
 0x104   :  { %v43_v22 = vpop.permute.xlu1 %42 }
 0x105   :  { %v49_v24 = vmul.f32 %v43_v22, %v29_v14 }
 0x107   :  { %v50_v25 = vadd.f32 %v49_v24, %v48_v23 }
 0x109   :  { %v51_v27 = vadd.f32 %v50_v25, %v41_v26 }
 0x10b   :  { %52 = vst [vmem:[#allocation5] sm:$0xff] %v51_v27 }
 0x10c   :  { %108 = shalt.err (!%p105_p12)
}
 0x10d   :  { %s109_s24 = scalar_lea.hbm %s165_s1, 128 }
 0x10e   :  { %p110_p13 = scmp.ne.s32.totalorder %s165_s1, %s109_s24  ;;  %p113_p0 = scmp.lt.u32.totalorder %s109_s24, %s165_s1 }
 0x110   :  { %p115_p1 = pnand %p113_p0, %p110_p13 }
 0x112   :  { %118 = shalt.err (!%p115_p1)
}
 0x113   :  { %62 = dma.vmem_to_hbm [thread:$0]  %s60_s20, 128, %s165_s1, [#allocation4]  }
 0x114   :  { %121 = dma.done.wait [#allocation4], 128  }
 0x115   :  { %122 = vsyncadd [#allocation4], 4294967168 }
 0x116   :  { %66 = vsyncpa [#allocation3], 1 }
 0x117   :  { %67 = vsyncpa [#allocation4], 1 }

</bundles_post_ra>
